<compile_context>
chip_gen: v7x
topology: tpu7x:2x2x1
jax: 0.10.0
libtpu: 0.0.40
codegen_flags: <defaults>
</compile_context>

<pallas_src>
import numpy as np
import jax
import jax.numpy as jnp
from jax.experimental import pallas as pl
from jax.experimental.pallas import tpu as pltpu

# ----------------------------- configuration --------------------------------
N_GAUSS     = 300           # demo size (deliberately NOT a multiple of 128 to exercise padding)
TILE_TARGET = 8192          # gaussians per grid step (sweep 4K / 8K / 16K)
LANE        = 128

N_JOINTS    = 24            # SMPL joints fed to the pose encoder
POSE_DIM    = 32            # HierarchicalPoseEncoder.n_output_dims (synthetic)
LATENT_DIM  = 8             # cfg.latent_dim
D_COND      = POSE_DIM + LATENT_DIM
FEATURE_DIM = 7             # cfg.feature_dim
D_BASE      = 3 + 2 + 4                      # xyz | scaling | rotation = 9
D_OUT       = D_BASE + FEATURE_DIM           # 16 (d_xyz | d_scale | d_rot | feature)
HIDDEN      = 32            # cfg.mlp.n_neurons

# hash grid (cfg.hashgrid)
HG_LEVELS   = 4
HG_FEATS    = 2
HG_LOG2_T   = 10
HG_TABLE    = 2 ** HG_LOG2_T
HG_BASE_RES = 4
HG_SCALE    = 2.0
F_IN        = HG_LEVELS * HG_FEATS           # hashgrid.n_output_dims = 8

# channel-major input slab rows: [ feat 0:8 | xyz 8:11 | scl 11:13 | rot 13:17 ]
D_IN_PACK   = F_IN + D_BASE                  # 17

# packed parameter buffer (weights pre-transposed for the channel-major matmuls):
#   rows  0:32  cols 0:8   = W1f^T      col 32 = b1_eff^T (= (cond @ W1c + b1)^T)
#   rows 32:64  cols 0:32  = W2^T       col 32 = b2^T
#   rows 64:80  cols 0:32  = W3^T       col 32 = b3^T
P_ROWS = HIDDEN + HIDDEN + D_OUT             # 80
P_COLS = HIDDEN + 1                          # 33

PRIMES = np.array([1, 2654435761, 805459861], dtype=np.uint32)


def _cdiv(a, b):
    return -(-a // b)


def _round_up(a, b):
    return _cdiv(a, b) * b


# ------------------------------ Pallas kernel --------------------------------
def _make_kernel(n_valid, tile):
    """n_valid / tile are static Python ints (closed over at trace time)."""

    def kernel(x_ref, p_ref, out_ref, sums_ref):
        # x_ref : [17, T] channel-major per-Gaussian slab (f32).
        # p_ref : [80, 33] packed pre-transposed weights / biases (f32).
        # out_ref : [16, T] deformed xyz|scl|rot (rows 0:9) + non-rigid feature (rows 9:16).
        # sums_ref: [8, 128] per-tile partial sums of the 3 regularizer norms (rows 0:3).
        feat = x_ref[0:F_IN, :]                          # [8,  T]
        base = x_ref[F_IN:F_IN + D_BASE, :]              # [9,  T]

        w1t = p_ref[0:HIDDEN, 0:F_IN]                    # [32, 8]
        b1  = p_ref[0:HIDDEN, HIDDEN:P_COLS]             # [32, 1]
        w2t = p_ref[HIDDEN:2 * HIDDEN, 0:HIDDEN]         # [32, 32]
        b2  = p_ref[HIDDEN:2 * HIDDEN, HIDDEN:P_COLS]    # [32, 1]
        w3t = p_ref[2 * HIDDEN:P_ROWS, 0:HIDDEN]         # [16, 32]
        b3  = p_ref[2 * HIDDEN:P_ROWS, HIDDEN:P_COLS]    # [16, 1]

        # VanillaCondMLP with the cond contribution folded into b1 (exact numerics):
        #   concat(feature, cond) @ W1 + b1 == feature @ W1f + (cond @ W1c + b1)
        h = jnp.dot(w1t, feat, preferred_element_type=jnp.float32) + b1   # [32, T]
        h = jnp.maximum(h, 0.0)
        h = jnp.dot(w2t, h, preferred_element_type=jnp.float32) + b2      # [32, T]
        h = jnp.maximum(h, 0.0)
        deltas = jnp.dot(w3t, h, preferred_element_type=jnp.float32) + b3  # [16, T]

        # scale_offset == 'logit' (plain add in raw _scaling space), rot_offset == 'add'
        # (no renormalization), exactly as the PyTorch reference.  Two lane-dense stores.
        out_ref[0:D_BASE, :]      = base + deltas[0:D_BASE, :]
        out_ref[D_BASE:D_OUT, :]  = deltas[D_BASE:D_OUT, :]

        # Per-tile partial sums of the regularizer norms.  Pad columns (from N-padding)
        # are masked out so the wrapper mean over the true N is exact.
        d_xyz = deltas[0:3, :]
        d_scl = deltas[3:5, :]
        d_rot = deltas[5:9, :]
        nrm_xyz = jnp.sqrt(jnp.sum(d_xyz * d_xyz, axis=0, keepdims=True))  # [1, T]
        l1_scl  = jnp.sum(jnp.abs(d_scl), axis=0, keepdims=True)           # [1, T]
        l1_rot  = jnp.sum(jnp.abs(d_rot), axis=0, keepdims=True)           # [1, T]

        col = jax.lax.broadcasted_iota(jnp.int32, (1, tile), 1)
        valid = col < (n_valid - pl.program_id(0) * tile)                  # [1, T] bool

        s_xyz = jnp.sum(jnp.where(valid, nrm_xyz, 0.0), axis=1, keepdims=True)  # [1, 1]
        s_scl = jnp.sum(jnp.where(valid, l1_scl, 0.0), axis=1, keepdims=True)
        s_rot = jnp.sum(jnp.where(valid, l1_rot, 0.0), axis=1, keepdims=True)

        sums_ref[0:1, :] = jnp.broadcast_to(s_xyz, (1, LANE))
        sums_ref[1:2, :] = jnp.broadcast_to(s_scl, (1, LANE))
        sums_ref[2:3, :] = jnp.broadcast_to(s_rot, (1, LANE))
        sums_ref[3:8, :] = jnp.zeros((5, LANE), jnp.float32)

    return kernel


def nonrigid_deform_pallas(feat, xyz, scaling, rotation, cond, params,
                           tile_target=TILE_TARGET):
    """Conditional MLP + additive offsets + regularizer partial sums in one Pallas kernel.

    Returns:
      packed    : [N, 16] -> cols 0:3 new xyz, 3:5 new scaling, 5:9 new rotation,
                  9:16 non_rigid_feature.
      loss_sums : [3]     -> sum over N of (||d_xyz||_2, ||d_scale||_1, ||d_rot||_1).
    """
    n = feat.shape[0]

    # Lane-aligned tiling with wrapper-side padding (works for any N, waste < 1 tile).
    grid_n = max(1, _cdiv(n, tile_target))
    tile = _round_up(_cdiv(n, grid_n), LANE)
    grid_n = _cdiv(n, tile)
    n_pad = grid_n * tile

    # Fold the conditioning matmul into an effective first-layer bias (tiny, once per call).
    b1_eff = (cond @ params["w1c"] + params["b1"]).astype(jnp.float32)     # [1, HIDDEN]

    # One packed, pre-transposed parameter buffer (1 constant operand instead of 6).
    pbuf = jnp.zeros((P_ROWS, P_COLS), jnp.float32)
    pbuf = pbuf.at[0:HIDDEN, 0:F_IN].set(params["w1f"].T)
    pbuf = pbuf.at[0:HIDDEN, HIDDEN:P_COLS].set(b1_eff.T)
    pbuf = pbuf.at[HIDDEN:2 * HIDDEN, 0:HIDDEN].set(params["w2"].T)
    pbuf = pbuf.at[HIDDEN:2 * HIDDEN, HIDDEN:P_COLS].set(params["b2"].T)
    pbuf = pbuf.at[2 * HIDDEN:P_ROWS, 0:HIDDEN].set(params["w3"].T)
    pbuf = pbuf.at[2 * HIDDEN:P_ROWS, HIDDEN:P_COLS].set(params["b3"].T)

    # Channel-major input slab [17, n_pad] (channels on sublanes, gaussians on lanes).
    slab = jnp.concatenate([feat, xyz, scaling, rotation], axis=-1).astype(jnp.float32)  # [n,17]
    slab = jnp.pad(slab, ((0, n_pad - n), (0, 0))).T                                     # [17,n_pad]

    kernel = _make_kernel(n, tile)

    grid_spec = pltpu.PrefetchScalarGridSpec(
        num_scalar_prefetch=0,
        grid=(grid_n,),
        in_specs=[
            pl.BlockSpec((D_IN_PACK, tile), lambda i: (0, i)),   # per-Gaussian slab
            pl.BlockSpec((P_ROWS, P_COLS), lambda i: (0, 0)),    # packed weights/biases
        ],
        out_specs=[
            pl.BlockSpec((D_OUT, tile), lambda i: (0, i)),       # deformed slab
            pl.BlockSpec((8, LANE), lambda i: (i, 0)),           # per-tile norm partial sums
        ],
    )

    out, sums = pl.pallas_call(
        kernel,
        out_shape=(jax.ShapeDtypeStruct((D_OUT, n_pad), jnp.float32),
                   jax.ShapeDtypeStruct((grid_n * 8, LANE), jnp.float32)),
        grid_spec=grid_spec,
        compiler_params=pltpu.CompilerParams(
            dimension_semantics=("parallel",)),   # shards tiles across v7x's 2 TensorCores
    )(slab, pbuf)

    packed = out[:, :n].T                                                   # [N, 16]
    loss_sums = jnp.sum(sums.reshape(grid_n, 8, LANE)[:, 0:3, 0], axis=0)   # [3]
    return packed, loss_sums


# ------------------------- plain-JAX glue (encoders) -------------------------
# TODO(synk): the multi-resolution hash-grid encoding is a data-dependent per-row gather
# (tinycudann-style); it stays in plain JAX. Fusing the 32 KB tables into VMEM inside the
# kernel (review item) is a possible follow-up once in-kernel gather lowering is verified.
def hashgrid_encode(x01, tables):
    feats = []
    for lvl in range(HG_LEVELS):
        res = int(np.floor(HG_BASE_RES * (HG_SCALE ** lvl)))
        pos = x01 * res
        pos0f = jnp.floor(pos)
        w = pos - pos0f
        pos0 = pos0f.astype(jnp.int32)
        direct = (res + 1) ** 3 <= HG_TABLE
        acc = jnp.zeros((x01.shape[0], HG_FEATS), jnp.float32)
        for corner in range(8):
            offs = np.array([(corner >> d) & 1 for d in range(3)], dtype=np.int32)
            c = pos0 + offs[None, :]
            if direct:
                idx = (c[:, 0] + c[:, 1] * (res + 1) + c[:, 2] * (res + 1) ** 2).astype(jnp.int32)
            else:
                cu = c.astype(jnp.uint32)
                h = (cu[:, 0] * PRIMES[0]) ^ (cu[:, 1] * PRIMES[1]) ^ (cu[:, 2] * PRIMES[2])
                idx = (h & jnp.uint32(HG_TABLE - 1)).astype(jnp.int32)
            wc = jnp.prod(jnp.where(offs[None, :] == 1, w, 1.0 - w), axis=-1, keepdims=True)
            acc = acc + wc * tables[lvl][idx]
        feats.append(acc)
    return jnp.concatenate(feats, axis=-1)          # [N, F_IN]


# TODO(synk): HierarchicalPoseEncoder source is not provided; a deterministic single linear
# projection of (rots, Jtrs) stands in for it here.
def pose_encode(rots, Jtrs, params):
    x = jnp.concatenate([rots.reshape(1, -1), Jtrs.reshape(1, -1)], axis=-1)
    return x @ params["w_pose"] + params["b_pose"]   # [1, POSE_DIM]


def aabb_normalize_sym(xyz, aabb_min, aabb_max):
    return (xyz - aabb_min) / (aabb_max - aabb_min) * 2.0 - 1.0


# ------------------------------- full forward --------------------------------
def hashgrid_with_mlp_forward(gaussians, iteration, camera, params,
                              frame_dict, aabb, compute_loss=True, delay=0):
    xyz, scaling, rotation = gaussians
    n = xyz.shape[0]
    if iteration < delay:
        nr_feat = jnp.zeros((n, FEATURE_DIM), jnp.float32)
        return (xyz, scaling, rotation, nr_feat), {}

    rots, Jtrs, frame_id = camera
    pose_feat = pose_encode(rots, Jtrs, params)                       # [1, POSE_DIM]

    latent_idx = frame_dict.get(frame_id, len(frame_dict) - 1)
    latent_code = params["latent"][latent_idx][None, :]               # [1, LATENT_DIM]
    cond = jnp.concatenate([pose_feat, latent_code], axis=-1)         # [1, D_COND]

    xyz_norm = aabb_normalize_sym(xyz, aabb[0], aabb[1])
    x01 = (xyz_norm + 1.0) * 0.5
    feat = hashgrid_encode(x01, params["hash_tables"])                # [N, F_IN]

    packed, loss_sums = nonrigid_deform_pallas(feat, xyz, scaling, rotation, cond, params)

    new_xyz = packed[:, 0:3]
    new_scl = packed[:, 3:5]
    new_rot = packed[:, 5:9]
    nr_feat = packed[:, 9:9 + FEATURE_DIM]

    loss_reg = {}
    if compute_loss:
        inv_n = 1.0 / n
        loss_reg = {"nr_xyz":   loss_sums[0] * inv_n,
                    "nr_scale": loss_sums[1] * inv_n,
                    "nr_rot":   loss_sums[2] * inv_n}
    return (new_xyz, new_scl, new_rot, nr_feat), loss_reg


# ------------------------------ param init -----------------------------------
def init_params(key):
    ks = jax.random.split(key, 10)
    pose_in = N_JOINTS * 4 + N_JOINTS * 3

    def lin(k, fan_in, fan_out):
        return jax.random.normal(k, (fan_in, fan_out), jnp.float32) / np.sqrt(fan_in)

    return {
        "w_pose": lin(ks[0], pose_in, POSE_DIM),
        "b_pose": jnp.zeros((1, POSE_DIM), jnp.float32),
        "latent": jax.random.normal(ks[1], (3, LATENT_DIM), jnp.float32) * 0.01,
        "hash_tables": jax.random.uniform(ks[2], (HG_LEVELS, HG_TABLE, HG_FEATS),
                                          jnp.float32, -1e-2, 1e-2),
        "w1f": lin(ks[3], F_IN, HIDDEN),
        "w1c": lin(ks[4], D_COND, HIDDEN),
        "b1": jnp.zeros((1, HIDDEN), jnp.float32),
        "w2": lin(ks[5], HIDDEN, HIDDEN),
        "b2": jnp.zeros((1, HIDDEN), jnp.float32),
        "w3": lin(ks[6], HIDDEN, D_OUT) * 0.1,
        "b3": jnp.zeros((1, D_OUT), jnp.float32),
    }


# ------------------------- plain-JAX reference (check) ------------------------
def _reference_forward(feat, xyz, scaling, rotation, cond, params):
    b1_eff = cond @ params["w1c"] + params["b1"]
    h = jnp.maximum(feat @ params["w1f"] + b1_eff, 0.0)
    h = jnp.maximum(h @ params["w2"] + params["b2"], 0.0)
    deltas = h @ params["w3"] + params["b3"]
    new_xyz = xyz + deltas[:, 0:3]
    new_scl = scaling + deltas[:, 3:5]
    new_rot = rotation + deltas[:, 5:9]
    nr_feat = deltas[:, 9:]
    lx = jnp.mean(jnp.sqrt(jnp.sum(deltas[:, 0:3] ** 2, axis=-1)))
    ls = jnp.mean(jnp.sum(jnp.abs(deltas[:, 3:5]), axis=-1))
    lr = jnp.mean(jnp.sum(jnp.abs(deltas[:, 5:9]), axis=-1))
    return (new_xyz, new_scl, new_rot, nr_feat), (lx, ls, lr)


# ---------------------------------- main --------------------------------------
if __name__ == "__main__":
    key = jax.random.PRNGKey(0)
    k_xyz, k_scl, k_rot, k_r, k_j, k_p = jax.random.split(key, 6)

    xyz = jax.random.uniform(k_xyz, (N_GAUSS, 3), jnp.float32, -0.5, 0.5)
    scaling = jax.random.normal(k_scl, (N_GAUSS, 2), jnp.float32) * 0.1
    rotation = jax.random.normal(k_rot, (N_GAUSS, 4), jnp.float32)

    rots = jax.random.normal(k_r, (1, N_JOINTS, 4), jnp.float32)
    Jtrs = jax.random.normal(k_j, (1, N_JOINTS, 3), jnp.float32)

    params = init_params(k_p)
    frame_dict = {0: 0, 1: 1, 2: 2}
    aabb = (jnp.full((3,), -1.0, jnp.float32), jnp.full((3,), 1.0, jnp.float32))

    gaussians = (xyz, scaling, rotation)
    camera = (rots, Jtrs, 1)      # frame_id = 1

    (new_xyz, new_scl, new_rot, nr_feat), losses = hashgrid_with_mlp_forward(
        gaussians, iteration=100, camera=camera, params=params,
        frame_dict=frame_dict, aabb=aabb, compute_loss=True, delay=0)

    jax.block_until_ready((new_xyz, new_scl, new_rot, nr_feat,
                           losses["nr_xyz"], losses["nr_scale"], losses["nr_rot"]))

    assert new_xyz.shape == (N_GAUSS, 3)
    assert new_scl.shape == (N_GAUSS, 2)
    assert new_rot.shape == (N_GAUSS, 4)
    assert nr_feat.shape == (N_GAUSS, FEATURE_DIM)

    # Numerical check against a plain-JAX reference (tolerance allows for MXU vs XLA
    # f32 matmul precision differences; real layout/slicing bugs would be O(0.1-1)).
    xyz_norm = aabb_normalize_sym(xyz, aabb[0], aabb[1])
    feat = hashgrid_encode((xyz_norm + 1.0) * 0.5, params["hash_tables"])
    pose_feat = pose_encode(rots, Jtrs, params)
    cond = jnp.concatenate([pose_feat, params["latent"][1][None, :]], axis=-1)
    (r_xyz, r_scl, r_rot, r_feat), (r_lx, r_ls, r_lr) = _reference_forward(
        feat, xyz, scaling, rotation, cond, params)

    tol = dict(atol=5e-2, rtol=5e-2)
    np.testing.assert_allclose(np.asarray(new_xyz), np.asarray(r_xyz), **tol)
    np.testing.assert_allclose(np.asarray(new_scl), np.asarray(r_scl), **tol)
    np.testing.assert_allclose(np.asarray(new_rot), np.asarray(r_rot), **tol)
    np.testing.assert_allclose(np.asarray(nr_feat), np.asarray(r_feat), **tol)
    np.testing.assert_allclose(np.asarray(losses["nr_xyz"]), np.asarray(r_lx), **tol)
    np.testing.assert_allclose(np.asarray(losses["nr_scale"]), np.asarray(r_ls), **tol)
    np.testing.assert_allclose(np.asarray(losses["nr_rot"]), np.asarray(r_lr), **tol)

    print("KERNEL_OK")
</pallas_src>

<mosaic_0001>
module attributes {stable_mosaic.version = 11 : i64} {
  func.func @kernel(%arg0: i32, %arg1: memref<17x384xf32, #tpu.memory_space<vmem>>, %arg2: memref<80x33xf32, #tpu.memory_space<vmem>>, %arg3: memref<16x384xf32, #tpu.memory_space<vmem>>, %arg4: memref<8x128xf32, #tpu.memory_space<vmem>>) attributes {dimension_semantics = [#tpu.dimension_semantics<parallel>], iteration_bounds = array<i64: 1>, scalar_prefetch = 0 : i64, scratch_operands = 0 : i64, tpu.core_type = #tpu.core_type<tc>, window_params = [{transform_indices = @transform_0, window_bounds = array<i64: 17, 384>}, {pipeline_mode = #tpu.pipeline_mode<synchronous>, transform_indices = @transform_1, window_bounds = array<i64: 80, 33>}, {transform_indices = @transform_2, window_bounds = array<i64: 16, 384>}, {transform_indices = @transform_3, window_bounds = array<i64: 8, 128>}]} {
    %c0 = arith.constant 0 : index
    %c0_0 = arith.constant 0 : index
    %0 = vector.load %arg1[%c0, %c0_0] : memref<17x384xf32, #tpu.memory_space<vmem>>, vector<8x384xf32>
    %c8 = arith.constant 8 : index
    %c0_1 = arith.constant 0 : index
    %1 = vector.load %arg1[%c8, %c0_1] : memref<17x384xf32, #tpu.memory_space<vmem>>, vector<9x384xf32>
    %c0_2 = arith.constant 0 : index
    %c0_3 = arith.constant 0 : index
    %2 = vector.load %arg2[%c0_2, %c0_3] : memref<80x33xf32, #tpu.memory_space<vmem>>, vector<32x8xf32>
    %c0_4 = arith.constant 0 : index
    %c32 = arith.constant 32 : index
    %3 = vector.load %arg2[%c0_4, %c32] : memref<80x33xf32, #tpu.memory_space<vmem>>, vector<32x1xf32>
    %c32_5 = arith.constant 32 : index
    %c0_6 = arith.constant 0 : index
    %4 = vector.load %arg2[%c32_5, %c0_6] : memref<80x33xf32, #tpu.memory_space<vmem>>, vector<32x32xf32>
    %c32_7 = arith.constant 32 : index
    %c32_8 = arith.constant 32 : index
    %5 = vector.load %arg2[%c32_7, %c32_8] : memref<80x33xf32, #tpu.memory_space<vmem>>, vector<32x1xf32>
    %c64 = arith.constant 64 : index
    %c0_9 = arith.constant 0 : index
    %6 = vector.load %arg2[%c64, %c0_9] : memref<80x33xf32, #tpu.memory_space<vmem>>, vector<16x32xf32>
    %c64_10 = arith.constant 64 : index
    %c32_11 = arith.constant 32 : index
    %7 = vector.load %arg2[%c64_10, %c32_11] : memref<80x33xf32, #tpu.memory_space<vmem>>, vector<16x1xf32>
    %cst = arith.constant dense<0.000000e+00> : vector<32x384xf32>
    %8 = tpu.matmul %2, %0, %cst {dimension_numbers = #tpu.dot_dimension_numbers<[1], [0], [0], [1], [0, 0, 1, 1], [], []>} : vector<32x8xf32>, vector<8x384xf32>, vector<32x384xf32> -> vector<32x384xf32>
    %9 = vector.broadcast %3 : vector<32x1xf32> to vector<32x384xf32>
    %10 = arith.addf %8, %9 : vector<32x384xf32>
    %cst_12 = arith.constant 0.000000e+00 : f32
    %11 = vector.broadcast %cst_12 : f32 to vector<32x384xf32>
    %12 = arith.maximumf %10, %11 : vector<32x384xf32>
    %cst_13 = arith.constant dense<0.000000e+00> : vector<32x384xf32>
    %13 = tpu.matmul %4, %12, %cst_13 {dimension_numbers = #tpu.dot_dimension_numbers<[1], [0], [0], [1], [0, 0, 1, 1], [], []>} : vector<32x32xf32>, vector<32x384xf32>, vector<32x384xf32> -> vector<32x384xf32>
    %14 = vector.broadcast %5 : vector<32x1xf32> to vector<32x384xf32>
    %15 = arith.addf %13, %14 : vector<32x384xf32>
    %cst_14 = arith.constant 0.000000e+00 : f32
    %16 = vector.broadcast %cst_14 : f32 to vector<32x384xf32>
    %17 = arith.maximumf %15, %16 : vector<32x384xf32>
    %cst_15 = arith.constant dense<0.000000e+00> : vector<16x384xf32>
    %18 = tpu.matmul %6, %17, %cst_15 {dimension_numbers = #tpu.dot_dimension_numbers<[1], [0], [0], [1], [0, 0, 1, 1], [], []>} : vector<16x32xf32>, vector<32x384xf32>, vector<16x384xf32> -> vector<16x384xf32>
    %19 = vector.broadcast %7 : vector<16x1xf32> to vector<16x384xf32>
    %20 = arith.addf %18, %19 : vector<16x384xf32>
    %21 = vector.extract_strided_slice %20 {offsets = [0, 0], sizes = [9, 384], strides = [1, 1]} : vector<16x384xf32> to vector<9x384xf32>
    %22 = arith.addf %1, %21 : vector<9x384xf32>
    %c0_16 = arith.constant 0 : index
    %c0_17 = arith.constant 0 : index
    %23 = vector.load %arg3[%c0_16, %c0_17] : memref<16x384xf32, #tpu.memory_space<vmem>>, vector<9x384xf32>
    tpu.vector_store %arg3[%c0_16, %c0_17], %22 {strides = array<i32>} : memref<16x384xf32, #tpu.memory_space<vmem>>, vector<9x384xf32>,
    %24 = vector.extract_strided_slice %20 {offsets = [9, 0], sizes = [7, 384], strides = [1, 1]} : vector<16x384xf32> to vector<7x384xf32>
    %c9 = arith.constant 9 : index
    %c0_18 = arith.constant 0 : index
    %25 = vector.load %arg3[%c9, %c0_18] : memref<16x384xf32, #tpu.memory_space<vmem>>, vector<7x384xf32>
    tpu.vector_store %arg3[%c9, %c0_18], %24 {strides = array<i32>} : memref<16x384xf32, #tpu.memory_space<vmem>>, vector<7x384xf32>,
    %26 = vector.extract_strided_slice %20 {offsets = [0, 0], sizes = [3, 384], strides = [1, 1]} : vector<16x384xf32> to vector<3x384xf32>
    %27 = vector.extract_strided_slice %20 {offsets = [3, 0], sizes = [2, 384], strides = [1, 1]} : vector<16x384xf32> to vector<2x384xf32>
    %28 = vector.extract_strided_slice %20 {offsets = [5, 0], sizes = [4, 384], strides = [1, 1]} : vector<16x384xf32> to vector<4x384xf32>
    %29 = arith.mulf %26, %26 : vector<3x384xf32>
    %cst_19 = arith.constant dense<0.000000e+00> : vector<384xf32>
    %30 = vector.multi_reduction <add>, %29, %cst_19 [0] : vector<3x384xf32> to vector<384xf32>
    %31 = vector.shape_cast %30 : vector<384xf32> to vector<1x384xf32>
    %32 = math.sqrt %31 : vector<1x384xf32>
    %33 = math.absf %27 : vector<2x384xf32>
    %cst_20 = arith.constant dense<0.000000e+00> : vector<384xf32>
    %34 = vector.multi_reduction <add>, %33, %cst_20 [0] : vector<2x384xf32> to vector<384xf32>
    %35 = vector.shape_cast %34 : vector<384xf32> to vector<1x384xf32>
    %36 = math.absf %28 : vector<4x384xf32>
    %cst_21 = arith.constant dense<0.000000e+00> : vector<384xf32>
    %37 = vector.multi_reduction <add>, %36, %cst_21 [0] : vector<4x384xf32> to vector<384xf32>
    %38 = vector.shape_cast %37 : vector<384xf32> to vector<1x384xf32>
    %39 = tpu.iota {dimensions = array<i32: 1>} : vector<1x384xi32>
    %c384_i32 = arith.constant 384 : i32
    %40 = arith.muli %arg0, %c384_i32 : i32
    %c300_i32 = arith.constant 300 : i32
    %41 = arith.subi %c300_i32, %40 : i32
    %42 = vector.broadcast %41 : i32 to vector<1x384xi32>
    %43 = arith.cmpi slt, %39, %42 : vector<1x384xi32>
    %cst_22 = arith.constant 0.000000e+00 : f32
    %44 = vector.broadcast %cst_22 : f32 to vector<1x384xf32>
    %45 = arith.select %43, %32, %44 : vector<1x384xi1>, vector<1x384xf32>
    %cst_23 = arith.constant dense<0.000000e+00> : vector<1xf32>
    %46 = vector.multi_reduction <add>, %45, %cst_23 [1] : vector<1x384xf32> to vector<1xf32>
    %47 = vector.shape_cast %46 : vector<1xf32> to vector<1x1xf32>
    %cst_24 = arith.constant 0.000000e+00 : f32
    %48 = vector.broadcast %cst_24 : f32 to vector<1x384xf32>
    %49 = arith.select %43, %35, %48 : vector<1x384xi1>, vector<1x384xf32>
    %cst_25 = arith.constant dense<0.000000e+00> : vector<1xf32>
    %50 = vector.multi_reduction <add>, %49, %cst_25 [1] : vector<1x384xf32> to vector<1xf32>
    %51 = vector.shape_cast %50 : vector<1xf32> to vector<1x1xf32>
    %cst_26 = arith.constant 0.000000e+00 : f32
    %52 = vector.broadcast %cst_26 : f32 to vector<1x384xf32>
    %53 = arith.select %43, %38, %52 : vector<1x384xi1>, vector<1x384xf32>
    %cst_27 = arith.constant dense<0.000000e+00> : vector<1xf32>
    %54 = vector.multi_reduction <add>, %53, %cst_27 [1] : vector<1x384xf32> to vector<1xf32>
    %55 = vector.shape_cast %54 : vector<1xf32> to vector<1x1xf32>
    %56 = vector.shape_cast %47 : vector<1x1xf32> to vector<1x1xf32>
    %57 = vector.broadcast %56 : vector<1x1xf32> to vector<1x128xf32>
    %c0_28 = arith.constant 0 : index
    %c0_29 = arith.constant 0 : index
    %58 = vector.load %arg4[%c0_28, %c0_29] : memref<8x128xf32, #tpu.memory_space<vmem>>, vector<1x128xf32>
    tpu.vector_store %arg4[%c0_28, %c0_29], %57 {strides = array<i32>} : memref<8x128xf32, #tpu.memory_space<vmem>>, vector<1x128xf32>,
    %59 = vector.shape_cast %51 : vector<1x1xf32> to vector<1x1xf32>
    %60 = vector.broadcast %59 : vector<1x1xf32> to vector<1x128xf32>
    %c1 = arith.constant 1 : index
    %c0_30 = arith.constant 0 : index
    %61 = vector.load %arg4[%c1, %c0_30] : memref<8x128xf32, #tpu.memory_space<vmem>>, vector<1x128xf32>
    tpu.vector_store %arg4[%c1, %c0_30], %60 {strides = array<i32>} : memref<8x128xf32, #tpu.memory_space<vmem>>, vector<1x128xf32>,
    %62 = vector.shape_cast %55 : vector<1x1xf32> to vector<1x1xf32>
    %63 = vector.broadcast %62 : vector<1x1xf32> to vector<1x128xf32>
    %c2 = arith.constant 2 : index
    %c0_31 = arith.constant 0 : index
    %64 = vector.load %arg4[%c2, %c0_31] : memref<8x128xf32, #tpu.memory_space<vmem>>, vector<1x128xf32>
    tpu.vector_store %arg4[%c2, %c0_31], %63 {strides = array<i32>} : memref<8x128xf32, #tpu.memory_space<vmem>>, vector<1x128xf32>,
    %cst_32 = arith.constant 0.000000e+00 : f32
    %65 = vector.broadcast %cst_32 : f32 to vector<5x128xf32>
    %c3 = arith.constant 3 : index
    %c0_33 = arith.constant 0 : index
    %66 = vector.load %arg4[%c3, %c0_33] : memref<8x128xf32, #tpu.memory_space<vmem>>, vector<5x128xf32>
    tpu.vector_store %arg4[%c3, %c0_33], %65 {strides = array<i32>} : memref<8x128xf32, #tpu.memory_space<vmem>>, vector<5x128xf32>,
    return
  }
  func.func @transform_0(%arg0: i32) -> (i32, i32) {
    %c0_i32 = arith.constant 0 : i32
    %c0_i32_0 = arith.constant 0 : i32
    return %c0_i32, %arg0 : i32, i32
  }
  func.func @transform_1(%arg0: i32) -> (i32, i32) {
    %c0_i32 = arith.constant 0 : i32
    %c0_i32_0 = arith.constant 0 : i32
    %c0_i32_1 = arith.constant 0 : i32
    return %c0_i32, %c0_i32_0 : i32, i32
  }
  func.func @transform_2(%arg0: i32) -> (i32, i32) {
    %c0_i32 = arith.constant 0 : i32
    %c0_i32_0 = arith.constant 0 : i32
    return %c0_i32, %arg0 : i32, i32
  }
  func.func @transform_3(%arg0: i32) -> (i32, i32) {
    %c0_i32 = arith.constant 0 : i32
    %c0_i32_0 = arith.constant 0 : i32
    return %arg0, %c0_i32 : i32, i32
  }
}

</mosaic_0001>

<bundles_post_ra>
// kernel: tpu_custom_call.1
= control target key start
LH: loop header
LB: loop body
LE: loop exit
PB: predicated region body
PF: predicated region fallthrough
CT: control target
= control target key end

     0   :  { %9 = vsyncpa [#allocation3], 0  ;;  %vm54_vm0 = vcmask 64512   ;;  %v996_v3 = vmov 0.0   ;;  %s1198_s0 = inlined_call_operand.vmem [shape: f32[17,384], index: 0, kind: input, shape index: {}]   ;;  %s1199_s1 = inlined_call_operand.vmem [shape: f32[80,33], index: 1, kind: input, shape index: {}]   ;;  %s1200_s2 = inlined_call_operand.hbm [shape: f32[16,384], index: 2, kind: output, shape index: {0}]   ;;  %s1201_s3 = inlined_call_operand.hbm [shape: f32[8,128], index: 3, kind: output, shape index: {1}]  }
   0x1   :  { %v16_v0 = vld [vmem:[%s1198_s0 + $0x8] sm:$0xff]  ;;  %v17_v1 = vld [vmem:[%s1198_s0 + $0x10] sm:$0xff]  ;;  %v15_v2 = vld [vmem:[%s1198_s0] sm:$0xff]  ;;  %799 = vst [vmem:[#allocation4 + $0x3] sm:$0x1f] %v996_v3  ;;  %127 = vmatprep.mubr.f32.mxu0 %v996_v3 }
   0x2   :  { %63 = vmatprep.subr.mxu0 %v16_v0  ;;  %869 = vmatprep.subr.mxu1 %v17_v1  ;;  %v24_v4 = vld [vmem:[%s1199_s1] sm:$0xff]  ;;  %v25_v5 = vld [vmem:[%s1199_s1 + $0x8] sm:$0xff]  ;;  %v26_v6 = vld [vmem:[%s1199_s1 + $0x10] sm:$0xff] }
   0x3   :  { %64 = vmatpush1.msra.mxu0 %v15_v2  ;;  %870 = vmatpush3.msra.mxu1 %v17_v1 }
   0x4   :  { %871 = vmatprep.mubr.msk.f32.mxu1 %vm54_vm0, %v24_v4  ;;  %830 = vmatmul.mubr.msk.f32.vlgmr.msra.gmra.mrb[0].mxu0 %vm54_vm0, %v24_v4 }
   0x5   :  { %872 = vmatmul.mubr.msk.f32.vlgmr.msra.gmra.mrb[0].mxu1 %vm54_vm0, %v25_v5 }
   0x6   :  { %10 = vsyncpa [#allocation5], 0  ;;  %133 = vmatprep.mubr.f32.mxu0 %v996_v3  ;;  %874 = vmatprep.mubr.msk.f32.mxu1 %vm54_vm0, %v26_v6  ;;  %v27_v7 = vld [vmem:[%s1199_s1 + $0x18] sm:$0xff]  ;;  %v997_v8 = vmov 32   ;;  %v1058_v9 = vld [vmem:[%s1199_s1 + $0x20] sm:$0xff]  ;;  %vm269_vm1 = vcmask 261120  }
   0x7   :  { %940 = vset.pattern.permute.xlu0 %v997_v8  ;;  %941 = vset.pattern.permute.xlu1 %v997_v8  ;;  %v1063_v10 = vld [vmem:[%s1199_s1 + $0x28] sm:$0xff]  ;;  %v1072_v11 = vld [vmem:[%s1199_s1 + $0x30] sm:$0xff]  ;;  %v1077_v12 = vld [vmem:[%s1199_s1 + $0x38] sm:$0xff]  ;;  %vm648_vm2 = vcmask 1042432   ;;  %vm703_vm3 = vcmask 1041408   ;;  %vm743_vm4 = vcmask 1043456  }
   0x8   :  { %36 = vperm.xlu0 %940, %v24_v4   ;;  %46 = vperm.xlu1 %941, %v26_v6   ;;  %v1084_v13 = vld [vmem:[%s1199_s1 + $0x40] sm:$0xff]  ;;  %v1089_v14 = vld [vmem:[%s1199_s1 + $0x48] sm:$0xff] }
   0x9   :  { %831 = vmatmul.mubr.msk.f32.gmra.mrb[2].mxu0 %vm54_vm0, %v25_v5  ;;  %875 = vmatmul.mubr.msk.f32.gmra.mrb[2].mxu1 %vm54_vm0, %v27_v7 }
   0xa   :  { %139 = vmatprep.mubr.f32.mxu0 %v996_v3  ;;  %342 = vmatprep.mubr.f32.mxu1 %v996_v3 }
   0xc   :  { %41 = vperm.xlu0 %940, %v25_v5   ;;  %51 = vperm.xlu1 %941, %v27_v7  }
   0xd   :  { %832 = vmatmul.mubr.msk.f32.gmra.mrb[4].mxu0 %vm54_vm0, %v26_v6 }
   0xe   :  { %145 = vmatprep.mubr.f32.mxu0 %v996_v3 }
  0x10   :  { %251 = vperm.xlu0 %940, %v1058_v9   ;;  %256 = vperm.xlu1 %941, %v1063_v10  }
  0x11   :  { %833 = vmatmul.mubr.msk.f32.gmra.mrb[6].mxu0 %vm54_vm0, %v27_v7 }
  0x12   :  { %885 = vmatprep.mubr.msk.f32.mxu0 %vm269_vm1, %v1058_v9 }
  0x14   :  { %261 = vperm.xlu0 %940, %v1072_v11   ;;  %266 = vperm.xlu1 %941, %v1077_v12  }
  0x18   :  { %466 = vperm.xlu0 %940, %v1084_v13   ;;  %471 = vperm.xlu1 %941, %v1089_v14  }
  0x87   :  { %v37_v15 = vpop.permute.xlu0 %36  ;;  %v47_v16 = vpop.permute.xlu1 %46 }
  0x8b   :  { %v42_v17 = vpop.permute.xlu0 %41  ;;  %v52_v24 = vpop.permute.xlu1 %51 }
  0x8f   :  { %v257_v61 = vpop.permute.xlu1 %256  ;;  %v252_v62 = vpop.permute.xlu0 %251 }
  0x93   :  { %v267_v5 = vpop.permute.xlu1 %266  ;;  %v262_v8 = vpop.permute.xlu0 %261 }
  0xd7   :  { %v129_v18 = vpop.f32.mrb[0].mxu0 }
  0xd8   :  { %v873_v19 = vpop.f32.mrb[0].mxu1  ;;  %v131_v21 = vpop.f32.mrb[1].mxu0  ;;  %v130_v25 = vadd.f32 %v129_v18, %v37_v15 }
  0xd9   :  { %v224_v20 = vadd.f32 %v873_v19, %v42_v17  ;;  %v218_v22 = vpop.f32.mrb[1].mxu1  ;;  %v132_v27 = vadd.f32 %v131_v21, %v37_v15 }
  0xda   :  { %v219_v23 = vadd.f32 %v218_v22, %v37_v15  ;;  %v237_v38 = vmax.f32 %v130_v25, 0.0 }
  0xdb   :  { %v242_v26 = vmax.f32 %v224_v20, 0.0  ;;  %v238_v41 = vmax.f32 %v132_v27, 0.0 }
  0xdc   :  { %v239_v28 = vmax.f32 %v219_v23, 0.0  ;;  %v135_v29 = vpop.f32.mrb[2].mxu0  ;;  %v876_v30 = vpop.f32.mrb[2].mxu1 }
  0xdd   :  { %v136_v31 = vadd.f32 %v135_v29, %v42_v17  ;;  %v234_v32 = vadd.f32 %v876_v30, %v52_v24  ;;  %v137_v33 = vpop.f32.mrb[3].mxu0  ;;  %v228_v34 = vpop.f32.mrb[3].mxu1 }
  0xde   :  { %v910_v35 = vpack.c.bf16 %v242_v26, %v239_v28  ;;  %v138_v36 = vadd.f32 %v137_v33, %v42_v17  ;;  %v229_v37 = vadd.f32 %v228_v34, %v47_v16 }
  0xdf   :  { %v240_v39 = vmax.f32 %v136_v31, 0.0  ;;  %v248_v40 = vmax.f32 %v234_v32, 0.0 }
  0xe0   :  { %v241_v42 = vmax.f32 %v138_v36, 0.0  ;;  %v245_v43 = vmax.f32 %v229_v37, 0.0  ;;  %v141_v44 = vpop.f32.mrb[4].mxu0  ;;  %911 = vmatprep.subr.bf16.mxu0 %v910_v35 }
  0xe1   :  { %v904_v45 = vpack.c.bf16 %v240_v39, %v237_v38  ;;  %v143_v46 = vpop.f32.mrb[5].mxu0  ;;  %913 = vmatpush3.bf16.msra.mxu0 %v910_v35  ;;  %v142_v49 = vadd.f32 %v141_v44, %v47_v16 }
  0xe2   :  { %v902_v47 = vpack.c.bf16 %v241_v42, %v238_v41  ;;  %v914_v48 = vpack.c.bf16 %v248_v40, %v245_v43  ;;  %v144_v50 = vadd.f32 %v143_v46, %v47_v16  ;;  %v1122_v46 = vpop.permute.xlu1 %471 }
  0xe3   :  { %v243_v55 = vmax.f32 %v142_v49, 0.0  ;;  %v467_v49 = vpop.permute.xlu0 %466 }
  0xe4   :  { %v147_v51 = vpop.f32.mrb[6].mxu0  ;;  %903 = vmatprep.subr.bf16.mxu1 %v902_v47  ;;  %915 = vmatprep.subr.bf16.mxu0 %v914_v48  ;;  %v244_v57 = vmax.f32 %v144_v50, 0.0  ;;  %v23_v47 = vld [vmem:[%s1198_s0 + $0x40] sm:$0x1] }
  0xe5   :  { %v148_v52 = vadd.f32 %v147_v51, %v52_v24  ;;  %v149_v53 = vpop.f32.mrb[7].mxu0  ;;  %905 = vmatpush1.bf16.msra.mxu1 %v904_v45  ;;  %917 = vmatpush3.bf16.msra.mxu0 %v914_v48  ;;  %v20_v51 = vld [vmem:[%s1198_s0 + $0x28] sm:$0xff] }
  0xe6   :  { %v150_v54 = vadd.f32 %v149_v53, %v52_v24 }
  0xe7   :  { %v246_v56 = vmax.f32 %v148_v52, 0.0 }
  0xe8   :  { %v247_v58 = vmax.f32 %v150_v54, 0.0  ;;  %886 = vmatmul.mubr.msk.f32.vlgmr.msra.gmra.mrb[8].mxu0 %vm269_vm1, %v1063_v10 }
  0xe9   :  { %v908_v59 = vpack.c.bf16 %v246_v56, %v243_v55  ;;  %888 = vmatprep.mubr.msk.f32.mxu0 %vm269_vm1, %v1072_v11 }
  0xea   :  { %v906_v60 = vpack.c.bf16 %v247_v58, %v244_v57 }
  0xec   :  { %907 = vmatprep.subr.bf16.mxu1 %v906_v60  ;;  %889 = vmatmul.mubr.msk.f32.gmra.mrb[10].mxu0 %vm269_vm1, %v1077_v12 }
  0xed   :  { %909 = vmatpush1.bf16.msra.mxu1 %v908_v59  ;;  %542 = vmatprep.mubr.f32.mxu0 %v996_v3 }
  0xf0   :  { %838 = vmatmul.mubr.msk.f32.vlgmr.msra.gmra.mrb[4].mxu1 %vm269_vm1, %v1058_v9 }
  0xf1   :  { %348 = vmatprep.mubr.f32.mxu1 %v996_v3 }
  0xf4   :  { %839 = vmatmul.mubr.msk.f32.gmra.mrb[6].mxu1 %vm269_vm1, %v1063_v10 }
  0xf5   :  { %354 = vmatprep.mubr.f32.mxu1 %v996_v3 }
  0xf8   :  { %840 = vmatmul.mubr.msk.f32.gmra.mrb[8].mxu1 %vm269_vm1, %v1072_v11 }
  0xf9   :  { %360 = vmatprep.mubr.f32.mxu1 %v996_v3 }
  0xfc   :  { %841 = vmatmul.mubr.msk.f32.gmra.mrb[10].mxu1 %vm269_vm1, %v1077_v12 }
  0xfd   :  { %899 = vmatprep.mubr.msk.f32.mxu1 %vm269_vm1, %v1084_v13 }
 0x1bb   :  { %v887_v63 = vpop.f32.mrb[8].mxu0 }
 0x1bc   :  { %v439_v0 = vadd.f32 %v887_v63, %v257_v61  ;;  %v433_v1 = vpop.f32.mrb[9].mxu0 }
 0x1bd   :  { %v434_v2 = vadd.f32 %v433_v1, %v252_v62 }
 0x1be   :  { %v457_v4 = vmax.f32 %v439_v0, 0.0 }
 0x1bf   :  { %v454_v6 = vmax.f32 %v434_v2, 0.0  ;;  %v890_v7 = vpop.f32.mrb[10].mxu0 }
 0x1c0   :  { %v449_v9 = vadd.f32 %v890_v7, %v267_v5  ;;  %v443_v10 = vpop.f32.mrb[11].mxu0  ;;  %v18_v7 = vld [vmem:[%s1198_s0 + $0x18] sm:$0xff] }
 0x1c1   :  { %v926_v11 = vpack.c.bf16 %v457_v4, %v454_v6  ;;  %v444_v15 = vadd.f32 %v443_v10, %v262_v8  ;;  %v765_v6 = vlaneseq }
 0x1c2   :  { %v463_v16 = vmax.f32 %v449_v9, 0.0 }
 0x1c3   :  { %v460_v12 = vmax.f32 %v444_v15, 0.0  ;;  %v344_v17 = vpop.f32.mrb[4].mxu1  ;;  %927 = vmatprep.subr.bf16.mxu1 %v926_v11 }
 0x1c4   :  { %v346_v18 = vpop.f32.mrb[5].mxu1  ;;  %929 = vmatpush3.bf16.msra.mxu1 %v926_v11  ;;  %v345_v20 = vadd.f32 %v344_v17, %v252_v62  ;;  %v19_v11 = vld [vmem:[%s1198_s0 + $0x20] sm:$0xff] }
 0x1c5   :  { %v930_v19 = vpack.c.bf16 %v463_v16, %v460_v12  ;;  %v347_v21 = vadd.f32 %v346_v18, %v252_v62 }
 0x1c6   :  { %v452_v26 = vmax.f32 %v345_v20, 0.0 }
 0x1c7   :  { %v350_v22 = vpop.f32.mrb[6].mxu1  ;;  %931 = vmatprep.subr.bf16.mxu1 %v930_v19  ;;  %v453_v28 = vmax.f32 %v347_v21, 0.0  ;;  %v766_v21 = vand.u32 127, %v765_v6 }
 0x1c8   :  { %v351_v23 = vadd.f32 %v350_v22, %v257_v61  ;;  %v352_v24 = vpop.f32.mrb[7].mxu1  ;;  %933 = vmatpush3.bf16.msra.mxu1 %v930_v19 }
 0x1c9   :  { %v353_v25 = vadd.f32 %v352_v24, %v257_v61 }
 0x1ca   :  { %v455_v27 = vmax.f32 %v351_v23, 0.0 }
 0x1cb   :  { %v456_v29 = vmax.f32 %v353_v25, 0.0  ;;  %v356_v30 = vpop.f32.mrb[8].mxu1  ;;  %900 = vmatmul.mubr.msk.f32.vlgmr.msra.gmra.mrb[12].mxu1 %vm269_vm1, %v1089_v14  ;;  %v21_v25 = vld [vmem:[%s1198_s0 + $0x30] sm:$0x1] }
 0x1cc   :  { %v920_v31 = vpack.c.bf16 %v455_v27, %v452_v26  ;;  %v358_v32 = vpop.f32.mrb[9].mxu1  ;;  %v357_v34 = vadd.f32 %v356_v30, %v262_v8 }
 0x1cd   :  { %v918_v33 = vpack.c.bf16 %v456_v29, %v453_v28  ;;  %v359_v35 = vadd.f32 %v358_v32, %v262_v8 }
 0x1ce   :  { %v458_v40 = vmax.f32 %v357_v34, 0.0 }
 0x1cf   :  { %v362_v36 = vpop.f32.mrb[10].mxu1  ;;  %919 = vmatprep.subr.bf16.mxu0 %v918_v33  ;;  %v459_v42 = vmax.f32 %v359_v35, 0.0 }
 0x1d0   :  { %v363_v37 = vadd.f32 %v362_v36, %v267_v5  ;;  %v364_v38 = vpop.f32.mrb[11].mxu1  ;;  %921 = vmatpush1.bf16.msra.mxu0 %v920_v31 }
 0x1d1   :  { %v365_v39 = vadd.f32 %v364_v38, %v267_v5 }
 0x1d2   :  { %v461_v41 = vmax.f32 %v363_v37, 0.0 }
 0x1d3   :  { %v462_v43 = vmax.f32 %v365_v39, 0.0 }
 0x1d4   :  { %v924_v44 = vpack.c.bf16 %v461_v41, %v458_v40  ;;  %v22_v41 = vld [vmem:[%s1198_s0 + $0x38] sm:$0x1]  ;;  %s998_s0 = smov [#allocation2]  }
 0x1d5   :  { %v922_v45 = vpack.c.bf16 %v462_v43, %v459_v42  ;;  %s805_s22 = sshll.u32 %s998_s0, 4  ;;  %s806_s22 = int_to_ptr.vmem [resolvable:$true] %s805_s22 }
 0x1d6   :  { %s948_s23 = scalar_lea.vmem %s806_s22, 768  ;;  %p953_p1 = scmp.lt.s32.totalorder %s806_s22, %s806_s22 }
 0x1d7   :  { %923 = vmatprep.subr.bf16.mxu0 %v922_v45  ;;  %p949_p0 = scmp.ne.s32.totalorder %s806_s22, %s948_s23  ;;  %p954_p2 = scmp.lt.s32.totalorder %s948_s23, %s948_s23 }
 0x1d8   :  { %925 = vmatpush1.bf16.msra.mxu0 %v924_v44 }
 0x1d9   :  { %p955_p3 = por %p954_p2, %p953_p1 }
 0x1db   :  { %846 = vmatmul.mubr.msk.f32.vlgmr.msra.gmra.mrb[12].mxu0 %vm269_vm1, %v1084_v13  ;;  %p956_p4 = pnand %p955_p3, %p949_p0 }
 0x1dc   :  { %548 = vmatprep.mubr.f32.mxu0 %v996_v3 }
 0x1df   :  { %847 = vmatmul.mubr.msk.f32.gmra.mrb[14].mxu0 %vm269_vm1, %v1089_v14 }
 0x29e   :  { %v901_v48 = vpop.f32.mrb[12].mxu1 }
 0x29f   :  { %v627_v50 = vadd.f32 %v901_v48, %v1122_v46  ;;  %v621_v13 = vpop.f32.mrb[13].mxu1 }
 0x2a0   :  { %v622_v52 = vadd.f32 %v621_v13, %v467_v49 }
 0x2a1   :  { %v635_v3 = vadd.f32 %v627_v50, %v23_v47  ;;  %644 = vst [vmem:[#allocation2 + $0x28] sm:$0xfe] %v627_v50  ;;  %v727_v53 = vand.u32 2147483647, %v627_v50 }
 0x2a2   :  { %v632_v14 = vadd.f32 %v622_v52, %v20_v51  ;;  %v647_v54 = vmul.f32 %v622_v52, %v622_v52  ;;  %v693_v55 = vand.u32 2147483647, %v622_v52 }
 0x2a3   :  { %641 = vst [vmem:[#allocation2 + $0x28] sm:$0x1] %v635_v3  ;;  %v738_v56 = vrot.slane %v727_v53, 5 }
 0x2a4   :  { %638 = vst [vmem:[#allocation2 + $0x10] sm:$0xff] %v632_v14  ;;  %v663_v57 = vsel %vm648_vm2, %v647_v54, 0.0  ;;  %v699_v58 = vrot.slane %v693_v55, 3  ;;  %v737_v59 = vrot.slane %v693_v55, 5 }
 0x2a5   :  { %v664_v60 = vrot.slane %v663_v57, 4 }
 0x2a6   :  { %v718_v61 = vsel %vm703_vm3, %v699_v58, 0.0  ;;  %v739_v62 = vsel %vm648_vm2, %v737_v59, %v738_v56 }
 0x2a7   :  { %v665_v63 = vadd.f32 %v664_v60, %v663_v57  ;;  %v719_v0 = vrot.slane %v718_v61, 4  ;;  %v758_v4 = vsel %vm743_vm4, %v739_v62, 0.0 }
 0x2a8   :  { %v759_v9 = vrot.slane %v758_v4, 4 }
 0x2a9   :  { %v666_v1 = vrot.slane %v665_v63, 2  ;;  %v720_v2 = vadd.f32 %v719_v0, %v718_v61 }
 0x2aa   :  { %v1144_v27 = vadd.f32 %v759_v9, %v758_v4 }
 0x2ab   :  { %v667_v5 = vadd.f32 %v666_v1, %v665_v63  ;;  %v721_v16 = vrot.slane %v720_v2, 2 }
 0x2ad   :  { %v668_v12 = vrot.slane %v667_v5, 1  ;;  %v722_v32 = vadd.f32 %v721_v16, %v720_v2 }
 0x2ae   :  { %v544_v8 = vpop.f32.mrb[12].mxu0 }
 0x2af   :  { %v545_v10 = vadd.f32 %v544_v8, %v467_v49  ;;  %v546_v15 = vpop.f32.mrb[13].mxu0  ;;  %v1148_v33 = vadd.f32 %v668_v12, %v667_v5  ;;  %v723_v60 = vrot.slane %v722_v32, 1  ;;  %v768_v5 = vadd.s32 256, %v766_v21 }
 0x2b0   :  { %v547_v17 = vadd.f32 %v546_v15, %v467_v49 }
 0x2b1   :  { %v630_v18 = vadd.f32 %v545_v10, %v18_v7  ;;  %v645_v19 = vmul.f32 %v545_v10, %v545_v10  ;;  %v691_v20 = vand.u32 2147483647, %v545_v10  ;;  %942 = vrsqrt.f32 %v1148_v33 }
 0x2b2   :  { %v631_v22 = vadd.f32 %v547_v17, %v19_v11  ;;  %v646_v23 = vmul.f32 %v547_v17, %v547_v17  ;;  %v692_v24 = vand.u32 2147483647, %v547_v17  ;;  %v550_v26 = vpop.f32.mrb[14].mxu0  ;;  %v761_v10 = vrot.slane %v1144_v27, 2 }
 0x2b3   :  { %636 = vst [vmem:[#allocation2] sm:$0xff] %v630_v18  ;;  %v649_v28 = vsel %vm648_vm2, %v645_v19, 0.0  ;;  %v697_v29 = vrot.slane %v691_v20, 3  ;;  %v551_v30 = vadd.f32 %v550_v26, %v1122_v46  ;;  %v552_v31 = vpop.f32.mrb[15].mxu0  ;;  %v731_v47 = vrot.slane %v691_v20, 5 }
 0x2b4   :  { %v650_v34 = vrot.slane %v649_v28, 4  ;;  %637 = vst [vmem:[#allocation2 + $0x8] sm:$0xff] %v631_v22  ;;  %v656_v35 = vsel %vm648_vm2, %v646_v23, 0.0  ;;  %v698_v36 = vrot.slane %v692_v24, 3  ;;  %v553_v45 = vadd.f32 %v552_v31, %v1122_v46 }
 0x2b5   :  { %v704_v37 = vsel %vm703_vm3, %v697_v29, 0.0  ;;  %v657_v38 = vrot.slane %v656_v35, 4  ;;  %v633_v39 = vadd.f32 %v551_v30, %v21_v25  ;;  %642 = vst [vmem:[#allocation2 + $0x18] sm:$0xfe] %v551_v30  ;;  %v725_v40 = vand.u32 2147483647, %v551_v30 }
 0x2b6   :  { %v651_v42 = vadd.f32 %v650_v34, %v649_v28  ;;  %v705_v43 = vrot.slane %v704_v37, 4  ;;  %v711_v44 = vsel %vm703_vm3, %v698_v36, 0.0  ;;  %v634_v13 = vadd.f32 %v553_v45, %v22_v41  ;;  %643 = vst [vmem:[#allocation2 + $0x20] sm:$0xfe] %v553_v45 }
 0x2b7   :  { %v658_v48 = vadd.f32 %v657_v38, %v656_v35  ;;  %v712_v49 = vrot.slane %v711_v44, 4  ;;  %639 = vst [vmem:[#allocation2 + $0x18] sm:$0x1] %v633_v39  ;;  %v732_v50 = vrot.slane %v725_v40, 5  ;;  %v726_v52 = vand.u32 2147483647, %v553_v45 }
 0x2b8   :  { %v652_v51 = vrot.slane %v651_v42, 2  ;;  %v706_v3 = vadd.f32 %v705_v43, %v704_v37  ;;  %v734_v56 = vrot.slane %v692_v24, 5  ;;  %640 = vst [vmem:[#allocation2 + $0x20] sm:$0x1] %v634_v13  ;;  %v724_v17 = vadd.f32 %v723_v60, %v722_v32 }
 0x2b9   :  { %v659_v53 = vrot.slane %v658_v48, 2  ;;  %v733_v14 = vsel %vm648_vm2, %v731_v47, %v732_v50  ;;  %v713_v54 = vadd.f32 %v712_v49, %v711_v44  ;;  %v735_v46 = vrot.slane %v726_v52, 5 }
 0x2ba   :  { %v653_v55 = vadd.f32 %v652_v51, %v651_v42  ;;  %v707_v57 = vrot.slane %v706_v3, 2  ;;  %v744_v61 = vsel %vm743_vm4, %v733_v14, 0.0  ;;  %vm774_vm5 = vcmp.lt.s32.totalorder %v768_v5, 300 }
 0x2bb   :  { %v660_v58 = vadd.f32 %v659_v53, %v658_v48  ;;  %v714_v59 = vrot.slane %v713_v54, 2  ;;  %v736_v63 = vsel %vm648_vm2, %v734_v56, %v735_v46  ;;  %v745_v1 = vrot.slane %v744_v61, 4  ;;  %v943_v21 = vpop.eup %942 }
 0x2bc   :  { %v654_v62 = vrot.slane %v653_v55, 1  ;;  %v708_v0 = vadd.f32 %v707_v57, %v706_v3  ;;  %v751_v6 = vsel %vm743_vm4, %v736_v63, 0.0  ;;  %v762_v20 = vadd.f32 %v761_v10, %v1144_v27 }
 0x2bd   :  { %v661_v2 = vrot.slane %v660_v58, 1  ;;  %v715_v4 = vadd.f32 %v714_v59, %v713_v54  ;;  %v746_v9 = vadd.f32 %v745_v1, %v744_v61  ;;  %v752_v16 = vrot.slane %v751_v6, 4 }
 0x2be   :  { %v655_v7 = vadd.f32 %v654_v62, %v653_v55  ;;  %v709_v8 = vrot.slane %v708_v0, 1  ;;  %v784_v24 = vsel %vm774_vm5, %v724_v17, 0.0  ;;  %v763_v30 = vrot.slane %v762_v20, 1 }
 0x2bf   :  { %v662_v11 = vadd.f32 %v661_v2, %v660_v58  ;;  %v716_v15 = vrot.slane %v715_v4, 1  ;;  %v747_v19 = vrot.slane %v746_v9, 2  ;;  %v753_v23 = vadd.f32 %v752_v16, %v751_v6 }
 0x2c0   :  { %v710_v12 = vadd.f32 %v709_v8, %v708_v0  ;;  %944 = vrsqrt.f32 %v655_v7  ;;  %v685_v31 = vmul.f32 %v943_v21, %v1148_v33  ;;  %vm686_vm6 = vcmp.eq.f32.partialorder %v1148_v33, inf }
 0x2c1   :  { %v717_v18 = vadd.f32 %v716_v15, %v715_v4  ;;  %946 = vrsqrt.f32 %v662_v11  ;;  %v748_v25 = vadd.f32 %v747_v19, %v746_v9  ;;  %v754_v28 = vrot.slane %v753_v23, 2 }
 0x2c2   :  { %vm688_vm7 = vcmp.eq.f32.partialorder %v1148_v33, 0.0  ;;  %v689_v27 = vand.u32 2147483648, %v1148_v33  ;;  %v764_v37 = vadd.f32 %v763_v30, %v762_v20  ;;  %vm672_vm8 = vcmp.eq.f32.partialorder %v655_v7, inf }
 0x2c3   :  { %v785_v22 = vadd.f32 %v717_v18, %v710_v12  ;;  %v749_v29 = vrot.slane %v748_v25, 1  ;;  %v755_v32 = vadd.f32 %v754_v28, %v753_v23  ;;  %v687_v40 = vsel %vm686_vm6, %v1148_v33, %v685_v31 }
 0x2c4   :  { %vm674_vm9 = vcmp.eq.f32.partialorder %v655_v7, 0.0  ;;  %v675_v42 = vand.u32 2147483648, %v655_v7  ;;  %vm679_vm10 = vcmp.eq.f32.partialorder %v662_v11, inf  ;;  %vm681_vm11 = vcmp.eq.f32.partialorder %v662_v11, 0.0 }
 0x2c5   :  { %v786_v26 = vadd.f32 %v785_v22, %v784_v24  ;;  %v750_v34 = vadd.f32 %v749_v29, %v748_v25  ;;  %v756_v35 = vrot.slane %v755_v32, 1  ;;  %v682_v45 = vand.u32 2147483648, %v662_v11 }
 0x2c6   :  { %v690_v50 = vsel %vm688_vm7, %v689_v27, %v687_v40  ;;  %v791_v51 = vsel %vm774_vm5, %v764_v37, 0.0 }
 0x2c7   :  { %787 = vadd.xlane.f32.xlu1 %v786_v26  ;;  %v757_v41 = vadd.f32 %v756_v35, %v755_v32  ;;  %v777_v53 = vsel %vm774_vm5, %v690_v50, 0.0 }
 0x2c9   :  { %v792_v47 = vadd.f32 %v757_v41, %v750_v34 }
 0x2ca   :  { %v945_v36 = vpop.eup %944 }
 0x2cb   :  { %v947_v38 = vpop.eup %946  ;;  %v671_v39 = vmul.f32 %v945_v36, %v655_v7  ;;  %v793_v52 = vadd.f32 %v792_v47, %v791_v51 }
 0x2cc   :  { %v678_v43 = vmul.f32 %v947_v38, %v662_v11 }
 0x2cd   :  { %v673_v44 = vsel %vm672_vm8, %v655_v7, %v671_v39 }
 0x2ce   :  { %v676_v48 = vsel %vm674_vm9, %v675_v42, %v673_v44  ;;  %v680_v49 = vsel %vm679_vm10, %v662_v11, %v678_v43 }
 0x2cf   :  { %v683_v13 = vsel %vm681_vm11, %v682_v45, %v680_v49 }
 0x2d0   :  { %v778_v3 = vadd.f32 %v683_v13, %v676_v48 }
 0x2d2   :  { %v779_v14 = vadd.f32 %v778_v3, %v777_v53 }
 0x2d4   :  { %780 = vadd.xlane.f32.xlu0 %v779_v14 }
 0x2d8   :  { %794 = vadd.xlane.f32.xlu0 %v793_v52 }
 0x2d9   :  { %959 = shalt.err (!%p956_p4)
}
 0x2da   :  { %s960_s26 = scalar_lea.hbm %s1200_s2, 768 }
 0x2db   :  { %p961_p5 = scmp.ne.s32.totalorder %s1200_s2, %s960_s26  ;;  %p964_p6 = scmp.lt.u32.totalorder %s960_s26, %s1200_s2 }
 0x2dd   :  { %p966_p7 = pnand %p964_p6, %p961_p5 }
 0x2df   :  { %969 = shalt.err (!%p966_p7)
}
 0x2e0   :  { %s999_s4 = smov 384   ;;  %s1000_s5 = smov 24  }
 0x2e1   :  { %811 = dma.vmem_to_hbm [thread:$0]  %s806_s22, 768, %s1200_s2, [#allocation3], %s999_s4, %s999_s4, %s1000_s5  }
 0x2e2   :  { %s1001_s8 = smov [#allocation4]  }
 0x2e3   :  { %s818_s9 = sshll.u32 %s1001_s8, 4  ;;  %s819_s9 = int_to_ptr.vmem [resolvable:$true] %s818_s9 }
 0x2e4   :  { %s970_s10 = scalar_lea.vmem %s819_s9, 128  ;;  %p975_p9 = scmp.lt.s32.totalorder %s819_s9, %s819_s9 }
 0x2e5   :  { %p971_p8 = scmp.ne.s32.totalorder %s819_s9, %s970_s10  ;;  %p976_p10 = scmp.lt.s32.totalorder %s970_s10, %s970_s10 }
 0x2e7   :  { %p977_p11 = por %p976_p10, %p975_p9 }
 0x2e9   :  { %p978_p12 = pnand %p977_p11, %p971_p8 }
 0x354   :  { %v788_v33 = vpop.xlane.xlu1 %787 }
 0x355   :  { %797 = vst [vmem:[#allocation4 + $0x1] sm:$0x1] %v788_v33 }
 0x361   :  { %v781_v54 = vpop.xlane.xlu0 %780 }
 0x362   :  { %796 = vst [vmem:[#allocation4] sm:$0x1] %v781_v54 }
 0x365   :  { %v795_v55 = vpop.xlane.xlu0 %794 }
 0x366   :  { %798 = vst [vmem:[#allocation4 + $0x2] sm:$0x1] %v795_v55 }
 0x367   :  { %981 = shalt.err (!%p978_p12)
}
 0x368   :  { %s982_s2 = scalar_lea.hbm %s1201_s3, 128 }
 0x369   :  { %p983_p13 = scmp.ne.s32.totalorder %s1201_s3, %s982_s2  ;;  %p986_p0 = scmp.lt.u32.totalorder %s982_s2, %s1201_s3 }
 0x36b   :  { %p988_p1 = pnand %p986_p0, %p983_p13 }
 0x36d   :  { %991 = shalt.err (!%p988_p1)
}
 0x36e   :  { %821 = dma.vmem_to_hbm [thread:$0]  %s819_s9, 128, %s1201_s3, [#allocation5]  }
 0x36f   :  { %992 = dma.done.wait [#allocation3], 768  }
 0x370   :  { %993 = vsyncadd [#allocation3], 4294966528 }
 0x371   :  { %994 = dma.done.wait [#allocation5], 128  }
 0x372   :  { %995 = vsyncadd [#allocation5], 4294967168 }
 0x373   :  { %828 = vsyncpa [#allocation3], 1 }
 0x374   :  { %829 = vsyncpa [#allocation5], 1 }

</bundles_post_ra>
